<compile_context>
chip_gen: v6e
topology: v6e:2x2x1
jax: 0.10.0
libtpu: 0.0.40
codegen_flags: <defaults>
</compile_context>

<pallas_src>
import jax
import jax.numpy as jnp
from jax.experimental import pallas as pl
from jax.experimental.pallas import tpu as pltpu

BN_EPS = 1e-5


# ------------------------------ Pallas kernels ------------------------------

def x_moments_kernel(x_ref, s_ref):
    """Per-tile input moments: Gram matrix (Cin,Cin) and per-channel sum (Cin,1)."""
    cin = s_ref.shape[2]
    x = x_ref[0]                                               # (Cin, k*W)
    gram = jax.lax.dot_general(x, x, (((1,), (1,)), ((), ())),
                               preferred_element_type=jnp.float32)   # (Cin, Cin)
    sx = jnp.sum(x, axis=1, keepdims=True)                     # (Cin, 1)
    s_ref[0, 0, :, 0:cin] = gram
    s_ref[0, 0, :, cin:cin + 1] = sx


def make_convt_bn_relu_kernel(Cout, W, k):
    """Fused ConvTranspose2d(2,2) + BN(scale,shift) + ReLU emitting NCHW order."""
    W2 = 2 * W

    def kernel(x_ref, wa_ref, wb_ref, scale_ref, shift_ref, o_ref):
        # x_ref: (1, Cin, k*2W) -- x duplicated along w, so lane h*2W + ow
        #        already carries the OUTPUT column index ow = 2w + dj.
        # wa/wb: (2*Cout, Cin), rows ordered di*Cout + co, for dj = 0 / 1.
        x2 = x_ref[0]
        ta = jnp.dot(wa_ref[...], x2, preferred_element_type=jnp.float32)
        tb = jnp.dot(wb_ref[...], x2, preferred_element_type=jnp.float32)
        col = jax.lax.broadcasted_iota(jnp.int32, ta.shape, 1)
        t = jnp.where(col % 2 == 0, ta, tb)          # conv output, row = (di, co)
        y = jnp.maximum(t * scale_ref[...] + shift_ref[...], 0.0)
        # Scatter (di, h) rows into the lane-flat NCHW layout:
        #   lane = (2*h + di) * 2W + ow.  Static slices, dense stores.
        for h in range(k):
            for di in range(2):
                row = 2 * h + di
                o_ref[0, :, row * W2:(row + 1) * W2] = (
                    y[di * Cout:(di + 1) * Cout, h * W2:(h + 1) * W2])

    return kernel


# ------------------------------ tiling helpers -------------------------------

def _tpu_vmem_bytes():
    try:
        return int(pltpu.get_tpu_info().vmem_capacity_bytes)
    except Exception:
        return 128 << 20            # conservative default (v5e/v6e physical)


def _block_bytes(k, W, Cin, Cout):
    """Conservative f32 footprint of one pass-2 grid step: double-buffered
    input/output blocks plus live intermediates (ta, tb, t, y) and small args."""
    lanes_in, lanes_out = 2 * k * W, 4 * k * W
    in_b = 2 * Cin * lanes_in * 4
    out_b = 2 * Cout * lanes_out * 4
    tmp_b = 4 * (2 * Cout) * lanes_in * 4
    small = 4 * (2 * Cout) * (Cin + 2) * 4
    return in_b + out_b + tmp_b + small


def _pick_rows(N, H, W, Cin, Cout, budget_bytes):
    """Input rows handled per grid step.

    k divides H; k*W (hence k*2W, k*4W) is a multiple of 128 or k == H; the
    per-step footprint fits the VMEM budget; keep >= ~8 grid steps alive for
    megacore sharding and the double-buffer pipeline when possible; bound the
    static row unroll."""
    cands = [k for k in range(1, H + 1)
             if H % k == 0 and ((k * W) % 128 == 0 or k == H)]
    fits = [k for k in cands if _block_bytes(k, W, Cin, Cout) <= budget_bytes]
    pool = fits if fits else [min(cands)]   # TODO(synk): pad/split huge odd images
    k_cap = max(1, (N * H) // 8)
    capped = [k for k in pool if k <= k_cap and k <= 64]
    if not capped:
        capped = [min(pool)]
    return max(capped)


# --------------------------------- wrapper -----------------------------------

def upsample_transposed_conv(x_nchw, weight, bias, gamma, beta):
    """x_nchw: (N, Cin, H, W); weight: (Cin, Cout, 2, 2); bias/gamma/beta: (Cout,)."""
    del bias  # cancelled exactly by the BatchNorm batch-mean subtraction
    N, Cin, H, W = x_nchw.shape
    Cout = weight.shape[1]
    W2, W4 = 2 * W, 4 * W

    x = x_nchw.astype(jnp.float32)
    wgt = weight.astype(jnp.float32)
    gamma = gamma.astype(jnp.float32)
    beta = beta.astype(jnp.float32)

    vmem_cap = _tpu_vmem_bytes()
    budget = vmem_cap // 4                            # ~32 MiB v5e/v6e, ~16 MiB v7x
    vmem_limit = int(min(vmem_cap * 3 // 4, 96 << 20))
    params = pltpu.CompilerParams(
        dimension_semantics=("parallel", "parallel"),
        vmem_limit_bytes=vmem_limit)

    k = _pick_rows(N, H, W, Cin, Cout, budget)
    num_r = H // k
    grid = (N, num_r)

    # ---- pass 1: input moments (reads only the small x, writes O(Cin^2)) ----
    x3 = x.reshape(N, Cin, H * W)                     # free view of NCHW
    stats = pl.pallas_call(
        x_moments_kernel,
        out_shape=jax.ShapeDtypeStruct((N, num_r, Cin, Cin + 1), jnp.float32),
        grid=grid,
        in_specs=[pl.BlockSpec((1, Cin, k * W), lambda n, r: (n, 0, r))],
        out_specs=pl.BlockSpec((1, 1, Cin, Cin + 1), lambda n, r: (n, r, 0, 0)),
        compiler_params=params,
    )(x3)

    # ---- tiny XLA fold: BN batch stats from input moments -------------------
    s = jnp.sum(stats, axis=(0, 1))                   # (Cin, Cin+1)
    gram, sum_x = s[:, :Cin], s[:, Cin]
    wf = wgt.reshape(Cin, Cout * 4)                   # cols = (co, di, dj)
    sum_q = wf.T @ sum_x                              # (4*Cout,)
    sumsq_q = jnp.einsum("cq,cd,dq->q", wf, gram, wf) # (4*Cout,)
    sum_t = jnp.sum(sum_q.reshape(Cout, 4), axis=1)
    sumsq_t = jnp.sum(sumsq_q.reshape(Cout, 4), axis=1)
    count = jnp.float32(N * 4 * H * W)                # = N * 2H * 2W output pixels
    mean = sum_t / count
    var = jnp.maximum(sumsq_t / count - mean * mean, 0.0)  # biased, like BN fwd
    scale_co = gamma * jax.lax.rsqrt(var + BN_EPS)
    shift_co = beta - mean * scale_co
    scale2 = jnp.tile(scale_co, 2).reshape(2 * Cout, 1)     # row = di*Cout + co
    shift2 = jnp.tile(shift_co, 2).reshape(2 * Cout, 1)

    # ---- weights and dj-duplicated input for the fused pass -----------------
    wp = jnp.transpose(wgt, (2, 3, 1, 0))             # (di, dj, Cout, Cin)
    wa = wp[:, 0].reshape(2 * Cout, Cin)              # dj = 0, rows di*Cout + co
    wb = wp[:, 1].reshape(2 * Cout, Cin)              # dj = 1
    # Duplicate x along w so pass 2's matmul lanes are already output columns.
    xw = jnp.repeat(x, 2, axis=3).reshape(N, Cin, H * W2)

    # ---- pass 2: fused conv + BN + ReLU, output directly in NCHW order ------
    z = pl.pallas_call(
        make_convt_bn_relu_kernel(Cout, W, k),
        out_shape=jax.ShapeDtypeStruct((N, Cout, H * W4), jnp.float32),
        grid=grid,
        in_specs=[pl.BlockSpec((1, Cin, k * W2), lambda n, r: (n, 0, r)),
                  pl.BlockSpec((2 * Cout, Cin), lambda n, r: (0, 0)),
                  pl.BlockSpec((2 * Cout, Cin), lambda n, r: (0, 0)),
                  pl.BlockSpec((2 * Cout, 1), lambda n, r: (0, 0)),
                  pl.BlockSpec((2 * Cout, 1), lambda n, r: (0, 0))],
        out_specs=pl.BlockSpec((1, Cout, k * W4), lambda n, r: (n, 0, r)),
        compiler_params=params,
    )(xw, wa, wb, scale2, shift2)

    # (N, Cout, H*4W) and NCHW (N, Cout, 2H, 2W) share the same memory layout:
    # this reshape is free -- no depth-to-space transpose pass anymore.
    return z.reshape(N, Cout, 2 * H, 2 * W)


# ------------------------------ reference (JAX) -------------------------------

def reference(x_nchw, weight, bias, gamma, beta):
    N, Cin, H, W = x_nchw.shape
    Cout = weight.shape[1]
    y = jnp.einsum("nchw,cokl->nohkwl", x_nchw, weight)      # (N,Cout,H,2,W,2)
    y = y.reshape(N, Cout, 2 * H, 2 * W) + bias[None, :, None, None]
    mean = jnp.mean(y, axis=(0, 2, 3), keepdims=True)
    var = jnp.mean((y - mean) ** 2, axis=(0, 2, 3), keepdims=True)
    y = (y - mean) * jax.lax.rsqrt(var + BN_EPS)
    y = y * gamma[None, :, None, None] + beta[None, :, None, None]
    return jnp.maximum(y, 0.0)


if __name__ == "__main__":
    key = jax.random.PRNGKey(0)
    N, Cin, Cout, H, W = 2, 4, 8, 16, 16

    k1, k2, k3, k4, k5 = jax.random.split(key, 5)
    x = jax.random.normal(k1, (N, Cin, H, W), jnp.float32)
    weight = jax.random.normal(k2, (Cin, Cout, 2, 2), jnp.float32) * 0.2
    bias = jax.random.normal(k3, (Cout,), jnp.float32) * 0.1
    gamma = 1.0 + 0.1 * jax.random.normal(k4, (Cout,), jnp.float32)
    beta = 0.1 * jax.random.normal(k5, (Cout,), jnp.float32)

    out = jax.block_until_ready(
        upsample_transposed_conv(x, weight, bias, gamma, beta))

    ref = reference(x, weight, bias, gamma, beta)
    assert out.shape == (N, Cout, 2 * H, 2 * W), out.shape
    max_err = float(jnp.max(jnp.abs(out - ref)))
    assert jnp.allclose(out, ref, atol=2e-4, rtol=2e-4), max_err

    print("KERNEL_OK")
</pallas_src>

<mosaic_0001>
module attributes {stable_mosaic.version = 11 : i64} {
  func.func @x_moments_kernel(%arg0: i32, %arg1: i32, %arg2: memref<1x4x128xf32, #tpu.memory_space<vmem>>, %arg3: memref<1x1x4x5xf32, #tpu.memory_space<vmem>>) attributes {dimension_semantics = [#tpu.dimension_semantics<parallel>, #tpu.dimension_semantics<parallel>], iteration_bounds = array<i64: 2, 2>, scalar_prefetch = 0 : i64, scratch_operands = 0 : i64, tpu.core_type = #tpu.core_type<tc>, window_params = [{transform_indices = @transform_0, window_bounds = array<i64: 1, 4, 128>}, {transform_indices = @transform_1, window_bounds = array<i64: 1, 1, 4, 5>}]} {
    %c0 = arith.constant 0 : index
    %c0_0 = arith.constant 0 : index
    %c0_1 = arith.constant 0 : index
    %0 = vector.load %arg2[%c0, %c0_0, %c0_1] : memref<1x4x128xf32, #tpu.memory_space<vmem>>, vector<1x4x128xf32>
    %1 = vector.shape_cast %0 : vector<1x4x128xf32> to vector<4x128xf32>
    %cst = arith.constant dense<0.000000e+00> : vector<4x4xf32>
    %2 = tpu.matmul %1, %1, %cst {dimension_numbers = #tpu.dot_dimension_numbers<[1], [1], [0], [0], [0, 0, 1, 0], [], []>} : vector<4x128xf32>, vector<4x128xf32>, vector<4x4xf32> -> vector<4x4xf32>
    %cst_2 = arith.constant dense<0.000000e+00> : vector<4xf32>
    %3 = vector.multi_reduction <add>, %1, %cst_2 [1] : vector<4x128xf32> to vector<4xf32>
    %4 = vector.shape_cast %3 : vector<4xf32> to vector<4x1xf32>
    %c0_3 = arith.constant 0 : index
    %c0_4 = arith.constant 0 : index
    %c0_5 = arith.constant 0 : index
    %c0_6 = arith.constant 0 : index
    %5 = vector.load %arg3[%c0_3, %c0_4, %c0_5, %c0_6] : memref<1x1x4x5xf32, #tpu.memory_space<vmem>>, vector<1x1x4x4xf32>
    %6 = vector.shape_cast %5 : vector<1x1x4x4xf32> to vector<4x4xf32>
    %7 = vector.shape_cast %2 : vector<4x4xf32> to vector<1x1x4x4xf32>
    tpu.vector_store %arg3[%c0_3, %c0_4, %c0_5, %c0_6], %7 {strides = array<i32>} : memref<1x1x4x5xf32, #tpu.memory_space<vmem>>, vector<1x1x4x4xf32>,
    %c0_7 = arith.constant 0 : index
    %c0_8 = arith.constant 0 : index
    %c0_9 = arith.constant 0 : index
    %c4 = arith.constant 4 : index
    %8 = vector.load %arg3[%c0_7, %c0_8, %c0_9, %c4] : memref<1x1x4x5xf32, #tpu.memory_space<vmem>>, vector<1x1x4x1xf32>
    %9 = vector.shape_cast %8 : vector<1x1x4x1xf32> to vector<4x1xf32>
    %10 = vector.shape_cast %4 : vector<4x1xf32> to vector<1x1x4x1xf32>
    tpu.vector_store %arg3[%c0_7, %c0_8, %c0_9, %c4], %10 {strides = array<i32>} : memref<1x1x4x5xf32, #tpu.memory_space<vmem>>, vector<1x1x4x1xf32>,
    return
  }
  func.func @transform_0(%arg0: i32, %arg1: i32) -> (i32, i32, i32) {
    %c0_i32 = arith.constant 0 : i32
    %c0_i32_0 = arith.constant 0 : i32
    return %arg0, %c0_i32, %arg1 : i32, i32, i32
  }
  func.func @transform_1(%arg0: i32, %arg1: i32) -> (i32, i32, i32, i32) {
    %c0_i32 = arith.constant 0 : i32
    %c0_i32_0 = arith.constant 0 : i32
    %c0_i32_1 = arith.constant 0 : i32
    return %arg0, %arg1, %c0_i32, %c0_i32_0 : i32, i32, i32, i32
  }
}

</mosaic_0001>

<bundles_post_ra>
// kernel: tpu_custom_call.1
= control target key start
LH: loop header
LB: loop body
LE: loop exit
PB: predicated region body
PF: predicated region fallthrough
CT: control target
= control target key end

     0   :  { %6 = vsyncpa [#allocation3], 0  ;;  %s740_s0 = inlined_call_operand.hbm [shape: f32[2,4,256], index: 0, kind: input, shape index: {}]   ;;  %s741_s1 = inlined_call_operand.hbm [shape: f32[2,2,4,5], index: 1, kind: output, shape index: {}]  }
   0x1   :  { %8 = vsyncpa [#allocation3 + $0x1], 0 }
   0x2   :  { %9 = vsyncpa [#allocation4], 0 }
   0x3   :  { %11 = vsyncpa [#allocation4 + $0x1], 0  ;;  %s572_s6 = smov 0   ;;  %s574_s7 = smov 0  }
   0x4   :  { %s576_s8 = smov 0   ;;  %s578_s9 = smov 0  }
   0x5   :  { %s580_s10 = smov 0   ;;  %s582_s11 = smov 0  }
   0x6   :  { %s584_s12 = smov 0   ;;  %s586_s13 = smov 0  }
   0x7 LB: > { %s330_s14 = sadd.s32 4294967295, %s556_s13   ;;  %s331_s15 = sadd.s32 4294967294, %s556_s13   ;;  %s556_s13 = sphi %s586_s13, %s17_s13   ;;  %s552_s12 = sphi %s584_s12, %s754_s12   ;;  %s548_s11 = sphi %s582_s11, %s753_s11   ;;  %s544_s10 = sphi %s580_s10, %s752_s10   ;;  %s540_s9 = sphi %s578_s9, %s751_s9   ;;  %s536_s8 = sphi %s576_s8, %s750_s8   ;;  %s532_s7 = sphi %s574_s7, %s749_s7   ;;  %s528_s6 = sphi %s572_s6, %s748_s6  }
   0x8   : > { %s26_s16 = sadd.s32 1, %s548_s11  ;;  %s29_s17 = sadd.s32 1, %s552_s12 }
   0x9   : > { %p27_p0 = scmp.ge.s32.totalorder %s26_s16, 2  ;;  %s38_s18 = sadd.s32 1, %s536_s8 }
   0xa   : > { %p45_p1 = scmp.ne.s32.totalorder %s536_s8, %s532_s7  ;;  %p46_p2 = scmp.eq.s32.totalorder %s556_s13, 0 }
   0xb   : > { %s756_s16 = smov (%p27_p0, %s26_s16), 0  ;;  %s758_s17 = smov (!%p27_p0, %s29_s17), %s552_s12 }
   0xc   : > { %s34_s19 = ssub.s32 %s548_s11, %s756_s16  ;;  %p625_p3 = por %p46_p2, %p45_p1 }
   0xd   : > { %p31_p4 = scmp.ge.s32.totalorder %s758_s17, 2  ;;  %p51_p5 = scmp.ne.s32.totalorder %s532_s7, %s528_s6 }
   0xe   : > { %p52_p6 = scmp.eq.s32.totalorder %s330_s14, 0  ;;  %p77_p7 = scmp.eq.s32.totalorder %s330_s14, 3 }
   0xf   : > { %s760_s17 = smov (%p31_p4, %s758_s17), 0  ;;  %p83_p10 = scmp.eq.s32.totalorder %s331_s15, 3 }
  0x10   : > { %p633_p8 = por %p52_p6, %p51_p5  ;;  %p637_p9 = por %p77_p7, %p45_p1 }
  0x11   : > { %s33_s23 = ssub.s32 %s552_s12, %s760_s17  ;;  %p643_p12 = por %p83_p10, %p51_p5 }
  0x12   : > { %s35_s24 = sor.u32 %s34_s19, %s33_s23  ;;  %p364_p13 = scmp.lt.s32.totalorder %s556_s13, 4 }
  0x13   : > { %p36_p11 = scmp.eq.s32.totalorder %s35_s24, 0  ;;  %s103_s26 = sand.u32 1, %s536_s8  }
  0x14   : > { %s745_s25 = scalar_select %p643_p12, 1, 0 }
  0x15   : > { %s650_s27 = scalar_select %p36_p11, %s536_s8, %s38_s18  }
  0x16   : > { %s334_s28 = sshll.u32 %s103_s26, 2  ;;  %s335_s29 = sshll.u32 %s552_s12, 1 }
  0x17   : > { %s112_s30 = sadd.s32 %s548_s11, %s335_s29  ;;  %s107_s2 = scalar_lea.vmem [#allocation2], %s334_s28 }
  0x18   : > { %s116_s3 = sshll.u32 %s107_s2, 4  ;;  %s336_s4 = sshll.u32 %s112_s30, 6  ;;  %s117_s3 = int_to_ptr.vmem [resolvable:$true] %s116_s3 }
  0x19   : > { %s114_s15 = scalar_lea.hbm %s740_s0, %s336_s4  ;;  %p659_p0 = pnand %p364_p13, %p625_p3 }
  0x1a   : > { %p337_p1 = scmp.ge.s32.totalorder %s556_s13, 1  ;;  %p121_p2 = scmp.lt.s32.totalorder %s556_s13, 5 }
  0x1b   : > { %s104_s18 = scalar_lea.sflag [#allocation3], %s103_s26  ;;  %p434_p4 = pneg %p659_p0 }
  0x1c   : > { %s445_s23 = scalar_lea.vmem %s117_s3, 64  ;;  %s558_s24 = smov [#allocation2]  }
  0x1d   : > { %p446_p5 = scmp.ne.s32.totalorder %s117_s3, %s445_s23  ;;  %s450_s28 = sshll.u32 %s558_s24, 4  ;;  %s451_s28 = int_to_ptr.vmem [resolvable:$false] %s450_s28 }
  0x1e   : > { %s452_s29 = scalar_lea.vmem %s451_s28, 128  ;;  %p453_p10 = scmp.lt.s32.totalorder %s117_s3, %s451_s28 }
  0x1f   : > { %p448_p6 = pnand %p446_p5, %p434_p4  ;;  %p454_p11 = scmp.lt.s32.totalorder %s452_s29, %s445_s23 }
  0x21   : > { %p449_p7 = pneg %p448_p6  ;;  %p455_p3 = por %p454_p11, %p453_p10 }
  0x23   : > { %p456_p13 = pnand %p455_p3, %p449_p7 }
  0x25   : > { %459 = shalt.err (!%p456_p13)
}
  0x26   : > { %359 = dma.hbm_to_vmem [thread:$0]  (!%p659_p0), %s114_s15, 64, %s117_s3, %s104_s18  }
  0x27   : > { %p122_p12 = pnand %p337_p1, %p121_p2 }
  0x28   : > { %s674_s20 = sand.u32 (!%p122_p12), 1, %s532_s7  }
  0x29   : > { %125 = sbr.rel (%p122_p12) target bundleno = 259 (0x103), region = 24  ;;  %s338_s26 = sshll.u32 (!%p122_p12), %s674_s20, 2 }
  0x2a   : > { %s128_s30 = scalar_lea.sflag (!%p122_p12), [#allocation3], %s674_s20  ;;  %s131_s2 = scalar_lea.vmem (!%p122_p12), [#allocation2], %s338_s26 }
  0x2e   : > { %519 = dma.done.wait (%p633_p8), %s128_s30, 64  }
  0x2f   : > { %521 = vsyncadd (%p633_p8), %s128_s30, 4294967232  ;;  %v559_v0 = vmov 0.0   ;;  %vm560_vm0 = vmmov 0   ;;  %vm221_vm1 = vcmask 1043456   ;;  %v150_v1 = vld [vmem:[%s131_s2] sm:$0xf] }
  0x30   : > { %347 = vmatprep.subr.mxu0 %v559_v0  ;;  %349 = vmatprep.mubr.msk.f32.mxu0 %vm560_vm0, %v559_v0  ;;  %v222_v2 = vsel %vm221_vm1, %v150_v1, 0.0  ;;  %s341_s3 = sshll.u32 %s544_s10, 1  ;;  %s149_s14 = scalar_lea.vmem [#allocation5], %s338_s26  ;;  %vm225_vm2 = vcmask 27648   ;;  %vm227_vm3 = vcmask 35872  }
  0x31   : > { %348 = vmatpush3.xpose.msra.mxu0 %v150_v1  ;;  %223 = vadd.xlane.f32.xlu0 %v222_v2  ;;  %s241_s4 = sadd.s32 %s540_s9, %s341_s3  ;;  %s245_s21 = sshll.u32 %s149_s14, 4  ;;  %s689_s21 = int_to_ptr.vmem [resolvable:$true] %s245_s21 }
  0x32   : > { %s342_s5 = sshll.u32 %s241_s4, 6  ;;  %s230_s9 = scalar_lea.sflag [#allocation4], %s674_s20 }
  0x33   : > { %s687_s18 = scalar_lea.hbm %s741_s1, %s342_s5  ;;  %s460_s10 = scalar_lea.vmem %s689_s21, 64 }
  0x34   : > { %350 = vmatmul.mubr.f32.vlgmr.msra.gmra.mxu0 %v150_v1  ;;  %p461_p8 = scmp.ne.s32.totalorder %s689_s21, %s460_s10  ;;  %s561_s23 = smov [#allocation5]  }
  0x35   : > { %s464_s24 = sshll.u32 %s561_s23, 4  ;;  %s465_s24 = int_to_ptr.vmem [resolvable:$false] %s464_s24 }
  0x36   : > { %p462_p12 = pnand %p461_p8, %p637_p9  ;;  %s466_s28 = scalar_lea.vmem %s465_s24, 128 }
  0x37   : > { %p467_p1 = scmp.lt.s32.totalorder %s689_s21, %s465_s24  ;;  %p468_p2 = scmp.lt.s32.totalorder %s466_s28, %s460_s10 }
  0x38   : > { %p463_p0 = pneg %p462_p12 }
  0x39   : > { %p469_p4 = por %p468_p2, %p467_p1 }
  0x3b   : > { %p470_p5 = pnand %p469_p4, %p463_p0 }
  0xba   : > { %v224_v3 = vpop.xlane.xlu0 %223 }
  0xf4   : > { %v217_v4 = vpop.f32.mrf.mxu0 }
  0xf5   : > { %226 = vst.msk [vmem:[%s149_s14] sm:$0xf] %vm225_vm2, %v217_v4 }
  0xf6   : > { %v351_v5 = vpop.f32.mrf.mxu0  ;;  %228 = vst.msk [vmem:[%s149_s14] sm:$0xf] %vm227_vm3, %v224_v3 }
  0xf7   : > { %473 = shalt.err (!%p470_p5)
}
  0xf8   : > { %s474_s29 = scalar_lea.hbm %s687_s18, 64  ;;  %s478_s30 = scalar_lea.hbm %s741_s1, 256 }
  0xf9   : > { %p475_p6 = scmp.ne.s32.totalorder %s687_s18, %s474_s29  ;;  %p479_p11 = scmp.lt.s32.totalorder %s687_s18, %s741_s1 }
  0xfa   : > { %p480_p3 = scmp.lt.s32.totalorder %s478_s30, %s474_s29 }
  0xfb   : > { %p476_p7 = pnand %p475_p6, %p637_p9 }
  0xfc   : > { %p481_p13 = por %p480_p3, %p479_p11 }
  0xfd   : > { %p477_p10 = pneg %p476_p7 }
  0xff   : > { %p482_p8 = pnand %p481_p13, %p477_p10 }
 0x101   : > { %485 = shalt.err (!%p482_p8)
}
 0x102   : > { %354 = dma.vmem_to_hbm [thread:$0]  (%p637_p9), %s689_s21, 64, %s687_s18, %s230_s9  }
 0x103 PF: > { %p365_p12 = scmp.ge.s32.totalorder %s556_s13, 2  ;;  %s257_s4 = sand.u32 1, %s528_s6  }
 0x104   : > { %p747_p0 = scmp.ne.s32.totalorder %s745_s25, 0  ;;  %s258_s5 = scalar_lea.sflag [#allocation4], %s257_s4 }
 0x106   : > { %p361_p1 = pnand %p365_p12, %p747_p0 }
 0x108   : > { %p362_p2 = pneg %p361_p1 }
 0x10a   : > { %523 = dma.done.wait (%p362_p2), %s258_s5, 64  }
 0x10b   : > { %525 = vsyncadd (%p362_p2), %s258_s5, 4294967232  ;;  %s17_s13 = sadd.s32 1, %s556_s13   ;;  %s748_s6 = smov %s532_s7 }
 0x10c   : > { %p14_p4 = scmp.ge.s32.totalorder %s17_s13, 6   ;;  %s749_s7 = smov %s536_s8 }
 0x10d   : > { %s750_s8 = smov %s650_s27  ;;  %s751_s9 = smov %s548_s11 }
 0x10e   : > { %s752_s10 = smov %s552_s12  ;;  %s753_s11 = smov %s756_s16 }
 0x10f   : > { %s754_s12 = smov %s760_s17  ;;  %16 = sbr.rel (!%p14_p4) target bundleno = 7 (0x7), region = 69 }
 0x114   :  { %263 = vsyncpa [#allocation3], 1 }
 0x115   :  { %265 = vsyncpa [#allocation3 + $0x1], 1 }
 0x116   :  { %266 = vsyncpa [#allocation4], 1 }
 0x117   :  { %268 = vsyncpa [#allocation4 + $0x1], 1 }

</bundles_post_ra>
